<compile_context>
chip_gen: v6e
topology: v6e:2x2x1
jax: 0.10.0
libtpu: 0.0.40
codegen_flags: <defaults>
</compile_context>

<pallas_src>
import jax
import jax.numpy as jnp
from jax.experimental import pallas as pl
from jax.experimental.pallas import tpu as pltpu


_MAX_ROW_TILE = 1024                     # steady-state rows per block (4 MiB f32)
_LANE_CHOICES = (1024, 512, 256, 128)    # lane-dense widths (multiples of 128)


def _mish_kernel(x_ref, o_ref):
    # mish(x) = x * tanh(softplus(x))
    #         = x * ((1 + e^x)^2 - 1) / ((1 + e^x)^2 + 1)
    #         = x - 2x / ((1 + e^x)^2 + 1)
    x = x_ref[...].astype(jnp.float32)
    t = 1.0 + jnp.exp(x)
    d = t * t + 1.0
    o_ref[...] = (x - (2.0 * x) / d).astype(o_ref.dtype)


def _round_up(a, b):
    return ((a + b - 1) // b) * b


def mish_pallas(x):
    """Elementwise Mish: x * tanh(softplus(x)).  Works for any input shape."""
    orig_shape = x.shape
    orig_dtype = x.dtype
    n = x.size

    # Pick the widest lane width that divides the element count exactly so
    # the common (multiple-of-128) case needs no pad / slice copies at all.
    lane = None
    for cand in _LANE_CHOICES:
        if n % cand == 0:
            lane = cand
            break

    flat = x.reshape(-1)
    padded = False
    if lane is None:
        # Truly ragged element count: single small tail pad (<= lane-1 elems).
        # TODO(synk): a 1-D ragged pallas_call with in-kernel tail masking
        # would avoid this extra HBM pass entirely.
        lane = _LANE_CHOICES[0]
        n_pad = _round_up(n, lane)
        flat = jnp.pad(flat, (0, n_pad - n))
        padded = True

    rows = flat.size // lane
    x2 = flat.reshape(rows, lane)

    # Row tiling: steady state uses _MAX_ROW_TILE-row blocks; medium inputs
    # are split in two so both TensorCores on a v7x chip get work; the last
    # block may be partial (Pallas edge masking — no row padding needed).
    if rows <= 8:
        block_rows = rows                       # tiny: block == full dim
    elif rows <= 2 * _MAX_ROW_TILE:
        block_rows = min(_MAX_ROW_TILE, _round_up((rows + 1) // 2, 8))
    else:
        block_rows = _MAX_ROW_TILE
    grid_rows = pl.cdiv(rows, block_rows)

    out2 = pl.pallas_call(
        _mish_kernel,
        out_shape=jax.ShapeDtypeStruct((rows, lane), orig_dtype),
        grid_spec=pltpu.PrefetchScalarGridSpec(
            num_scalar_prefetch=0,
            grid=(grid_rows,),
            in_specs=[pl.BlockSpec((block_rows, lane), lambda i: (i, 0))],
            out_specs=pl.BlockSpec((block_rows, lane), lambda i: (i, 0)),
        ),
        compiler_params=pltpu.CompilerParams(
            dimension_semantics=("parallel",),
            vmem_limit_bytes=32 << 20,
        ),
    )(x2)

    if padded:
        return out2.reshape(-1)[:n].reshape(orig_shape)
    return out2.reshape(orig_shape)


def _reference(x):
    return x * jnp.tanh(jax.nn.softplus(x))


if __name__ == "__main__":
    key = jax.random.PRNGKey(0)

    # Small NCHW activation map consistent with typical Mish usage.
    B, C, H, W = 2, 4, 16, 16
    x = jax.random.normal(key, (B, C, H, W), jnp.float32) * 3.0

    out = jax.block_until_ready(mish_pallas(x))
    ref = _reference(x)
    assert out.shape == x.shape
    assert jnp.allclose(out, ref, atol=1e-5, rtol=1e-5), "mismatch (small)"

    # Ragged (odd) element count -> pad fallback + partial edge row block.
    x_rag = jax.random.normal(jax.random.PRNGKey(1), (3, 7, 33, 65), jnp.float32) * 3.0
    out_rag = jax.block_until_ready(mish_pallas(x_rag))
    assert jnp.allclose(out_rag, _reference(x_rag), atol=1e-5, rtol=1e-5), "mismatch (ragged)"

    # Multi-block steady-state path (rows > 2*tile) with a partial last tile.
    x_big = jax.random.normal(jax.random.PRNGKey(2), (4, 8, 320, 256), jnp.float32) * 3.0
    out_big = jax.block_until_ready(mish_pallas(x_big))
    assert jnp.allclose(out_big, _reference(x_big), atol=1e-5, rtol=1e-5), "mismatch (large)"

    print("KERNEL_OK")
</pallas_src>

<mosaic_0001>
module attributes {stable_mosaic.version = 11 : i64} {
  func.func @_mish_kernel(%arg0: i32, %arg1: memref<2x1024xf32, #tpu.memory_space<vmem>>, %arg2: memref<2x1024xf32, #tpu.memory_space<vmem>>) attributes {dimension_semantics = [#tpu.dimension_semantics<parallel>], iteration_bounds = array<i64: 1>, scalar_prefetch = 0 : i64, scratch_operands = 0 : i64, tpu.core_type = #tpu.core_type<tc>, window_params = [{transform_indices = @transform_0, window_bounds = array<i64: 2, 1024>}, {transform_indices = @transform_1, window_bounds = array<i64: 2, 1024>}]} {
    %c0 = arith.constant 0 : index
    %c0_0 = arith.constant 0 : index
    %0 = vector.load %arg1[%c0, %c0_0] : memref<2x1024xf32, #tpu.memory_space<vmem>>, vector<2x1024xf32>
    %1 = math.exp %0 : vector<2x1024xf32>
    %cst = arith.constant 1.000000e+00 : f32
    %2 = vector.broadcast %cst : f32 to vector<2x1024xf32>
    %3 = arith.addf %2, %1 : vector<2x1024xf32>
    %4 = arith.mulf %3, %3 : vector<2x1024xf32>
    %cst_1 = arith.constant 1.000000e+00 : f32
    %5 = vector.broadcast %cst_1 : f32 to vector<2x1024xf32>
    %6 = arith.addf %4, %5 : vector<2x1024xf32>
    %cst_2 = arith.constant 2.000000e+00 : f32
    %7 = vector.broadcast %cst_2 : f32 to vector<2x1024xf32>
    %8 = arith.mulf %7, %0 : vector<2x1024xf32>
    %9 = arith.divf %8, %6 : vector<2x1024xf32>
    %10 = arith.subf %0, %9 : vector<2x1024xf32>
    %c0_3 = arith.constant 0 : index
    %c0_4 = arith.constant 0 : index
    %11 = vector.load %arg2[%c0_3, %c0_4] : memref<2x1024xf32, #tpu.memory_space<vmem>>, vector<2x1024xf32>
    tpu.vector_store %arg2[%c0_3, %c0_4], %10 {strides = array<i32>} : memref<2x1024xf32, #tpu.memory_space<vmem>>, vector<2x1024xf32>,
    return
  }
  func.func @transform_0(%arg0: i32) -> (i32, i32) {
    %c0_i32 = arith.constant 0 : i32
    %c0_i32_0 = arith.constant 0 : i32
    return %arg0, %c0_i32 : i32, i32
  }
  func.func @transform_1(%arg0: i32) -> (i32, i32) {
    %c0_i32 = arith.constant 0 : i32
    %c0_i32_0 = arith.constant 0 : i32
    return %arg0, %c0_i32 : i32, i32
  }
}

</mosaic_0001>

<bundles_post_ra>
// kernel: tpu_custom_call.1
= control target key start
LH: loop header
LB: loop body
LE: loop exit
PB: predicated region body
PF: predicated region fallthrough
CT: control target
= control target key end

     0   :  { %6 = vsyncpa [#allocation3], 0  ;;  %s130_s0 = inlined_call_operand.hbm [shape: f32[2,1024], index: 0, kind: input, shape index: {}]   ;;  %s131_s1 = inlined_call_operand.hbm [shape: f32[2,1024], index: 1, kind: output, shape index: {}]  }
   0x1   :  { %7 = vsyncpa [#allocation4], 0  ;;  %s112_s6 = smov [#allocation2]  }
   0x2   :  { %s14_s7 = sshll.u32 %s112_s6, 4  ;;  %s15_s7 = int_to_ptr.vmem [resolvable:$true] %s14_s7 }
   0x3   :  { %s76_s8 = scalar_lea.vmem %s15_s7, 256  ;;  %p81_p1 = scmp.lt.s32.totalorder %s15_s7, %s15_s7 }
   0x4   :  { %p77_p0 = scmp.ne.s32.totalorder %s15_s7, %s76_s8  ;;  %p82_p2 = scmp.lt.s32.totalorder %s76_s8, %s76_s8 }
   0x6   :  { %p83_p3 = por %p82_p2, %p81_p1 }
   0x8   :  { %p84_p4 = pnand %p83_p3, %p77_p0 }
   0xa   :  { %87 = shalt.err (!%p84_p4)
}
   0xb   :  { %17 = dma.hbm_to_vmem [thread:$0]  %s130_s0, 256, %s15_s7, [#allocation3]  }
   0xc   :  { %108 = dma.done.wait [#allocation3], 256  }
   0xd   :  { %109 = vsyncadd [#allocation3], 4294967040  ;;  %v21_v0 = vld [vmem:[#allocation2] sm:$0xff]  ;;  %v22_v1 = vld [vmem:[#allocation2 + $0x8] sm:$0xff]  ;;  %s113_s0 = smov [#allocation5]  }
   0xe   :  { %v23_v2 = vmul.f32 1.442695, %v21_v0  ;;  %v25_v3 = vmul.f32 1.442695, %v22_v1  ;;  %v33_v12 = vmul.f32 2.0, %v21_v0  ;;  %v34_v13 = vmul.f32 2.0, %v22_v1 }
   0xf   :  { %s49_s11 = sshll.u32 %s113_s0, 4  ;;  %s50_s11 = int_to_ptr.vmem [resolvable:$true] %s49_s11 }
  0x10   :  { %60 = vpow2.f32 %v23_v2  ;;  %s88_s12 = scalar_lea.vmem %s50_s11, 256  ;;  %p93_p6 = scmp.lt.s32.totalorder %s50_s11, %s50_s11 }
  0x11   :  { %62 = vpow2.f32 %v25_v3  ;;  %p89_p5 = scmp.ne.s32.totalorder %s50_s11, %s88_s12  ;;  %p94_p7 = scmp.lt.s32.totalorder %s88_s12, %s88_s12 }
  0x13   :  { %p95_p8 = por %p94_p7, %p93_p6 }
  0x15   :  { %p96_p9 = pnand %p95_p8, %p89_p5 }
  0x1d   :  { %v61_v4 = vpop.eup %60 }
  0x1e   :  { %v63_v5 = vpop.eup %62  ;;  %v27_v6 = vadd.f32 1.0, %v61_v4 }
  0x1f   :  { %v28_v7 = vadd.f32 1.0, %v63_v5 }
  0x20   :  { %v29_v8 = vmul.f32 %v27_v6, %v27_v6 }
  0x21   :  { %v30_v9 = vmul.f32 %v28_v7, %v28_v7 }
  0x22   :  { %v31_v10 = vadd.f32 1.0, %v29_v8 }
  0x23   :  { %v32_v11 = vadd.f32 1.0, %v30_v9 }
  0x24   :  { %64 = vrcp.f32 %v31_v10 }
  0x25   :  { %66 = vrcp.f32 %v32_v11 }
  0x31   :  { %v65_v14 = vpop.eup %64 }
  0x32   :  { %v67_v15 = vpop.eup %66  ;;  %v36_v16 = vmul.f32 %v65_v14, %v33_v12 }
  0x33   :  { %v38_v17 = vmul.f32 %v67_v15, %v34_v13 }
  0x34   :  { %v39_v18 = vsub.f32 %v21_v0, %v36_v16 }
  0x35   :  { %v40_v19 = vsub.f32 %v22_v1, %v38_v17 }
  0x36   :  { %41 = vst [vmem:[#allocation5] sm:$0xff] %v39_v18 }
  0x37   :  { %42 = vst [vmem:[#allocation5 + $0x8] sm:$0xff] %v40_v19 }
  0x38   :  { %99 = shalt.err (!%p96_p9)
}
  0x39   :  { %52 = dma.vmem_to_hbm [thread:$0]  %s50_s11, 256, %s131_s1, [#allocation4]  }
  0x3a   :  { %110 = dma.done.wait [#allocation4], 256  }
  0x3b   :  { %111 = vsyncadd [#allocation4], 4294967040 }
  0x3c   :  { %56 = vsyncpa [#allocation3], 1 }
  0x3d   :  { %57 = vsyncpa [#allocation4], 1 }

</bundles_post_ra>
